<compile_context>
chip_gen: v7x
topology: tpu7x:2x2x1
jax: 0.10.0
libtpu: 0.0.40
codegen_flags: <defaults>
</compile_context>

<pallas_src>
import jax
import jax.numpy as jnp
from jax.experimental import pallas as pl
from jax.experimental.pallas import tpu as pltpu


# ----------------------------------------------------------------------------
# Kernels
# ----------------------------------------------------------------------------
def _logreg_kernel(x_ref, w_ref, b_ref, o_ref):
    # x_ref: (TB, D) activation tile, input dtype (f32 or bf16)
    # w_ref: (1, D)  weight row, same dtype, VMEM-resident across the grid
    # b_ref: (1,)    f32 bias scalar in SMEM
    # o_ref: (1, TB) f32 lane-dense output row for this batch tile
    z = jax.lax.dot_general(
        w_ref[...], x_ref[...],
        dimension_numbers=(((1,), (1,)), ((), ())),   # contract over D
        preferred_element_type=jnp.float32,           # f32 accumulation
    )
    # exp/recip land on the EUP (separate issue slot from the VPU/MXU).
    o_ref[...] = jax.nn.sigmoid(z + b_ref[0]).astype(o_ref.dtype)


def _make_logreg_kernel_ktiled(d_total, tk):
    """Fallback kernel for very large D: feature dim tiled, f32 accumulator."""

    def kernel(x_ref, w_ref, b_ref, o_ref, acc_ref):
        k = pl.program_id(1)

        @pl.when(k == 0)
        def _():
            acc_ref[...] = jnp.zeros_like(acc_ref)

        # The last K block may extend past D: OOB reads are undefined, so scrub
        # them with a select (safe even for NaN garbage) before the matmul.
        col = k * tk + jax.lax.broadcasted_iota(jnp.int32, x_ref.shape, 1)
        valid = col < d_total
        x = jnp.where(valid, x_ref[...], 0)
        w = jnp.where(valid[0:1, :], w_ref[...], 0)

        acc_ref[...] += jax.lax.dot_general(
            w, x,
            dimension_numbers=(((1,), (1,)), ((), ())),
            preferred_element_type=jnp.float32,
        )

        @pl.when(k == pl.num_programs(1) - 1)
        def _():
            o_ref[...] = jax.nn.sigmoid(acc_ref[...] + b_ref[0]).astype(o_ref.dtype)

    return kernel


# ----------------------------------------------------------------------------
# Tile selection (generation-aware)
# ----------------------------------------------------------------------------
def _round_up(a: int, b: int) -> int:
    return -(-a // b) * b


def _vmem_budget():
    """Return (x double-buffer budget, vmem_limit_bytes) for this chip."""
    try:
        vmem_phys = int(pltpu.get_tpu_info().vmem_capacity_bytes)
    except Exception:
        vmem_phys = 64 * 1024 * 1024  # conservative: v7x per-core size
    # ~5/8 of physical VMEM for the double-buffered x tiles, capped at 64 MiB:
    #   v5e/v6e (128 MiB) -> 64 MiB budget, v7x (64 MiB) -> 40 MiB budget.
    x_budget = min(vmem_phys * 5 // 8, 64 * 1024 * 1024)
    # Raise the scoped-VMEM limit to cover the buffers plus weight/output/scratch
    # headroom; never above physical capacity.
    vmem_limit = min(vmem_phys, x_budget + (8 << 20))
    return x_budget, vmem_limit


def _choose_batch_tile(batch, d, itemsize, x_budget):
    """Largest batch tile whose two pipeline buffers fit the budget.

    Returns None if even a 128-row tile does not fit (caller falls back to
    K-tiling) -- this fixes the old 128-row floor that could exceed VMEM for
    very large D.
    """
    row_bytes = max(1, d * itemsize)
    tb_cap = min(2048, (x_budget // (2 * row_bytes)) // 128 * 128)
    if tb_cap < 128:
        return None
    if batch <= tb_cap:
        if batch <= 256:
            return max(batch, 1)  # single tile; block dims == full array dims
        # Split into >=2 tiles so v7x's second TensorCore gets work.
        return min(tb_cap, max(128, _round_up(-(-batch // 2), 128)))
    return tb_cap


def _choose_bk_tiles(batch, d, itemsize, x_budget):
    """Fallback tiles when the feature dim itself must be tiled."""
    tb = batch if batch <= 128 else 128
    denom = 2 * max(tb, 8) * itemsize
    tk = max(128, (x_budget // denom) // 128 * 128)
    if tk >= d:
        tk = d  # block == full feature dim is always legal
    return tb, tk


# ----------------------------------------------------------------------------
# pallas_call wrappers
# ----------------------------------------------------------------------------
def _batch_tiled_call(x2d, w, b, tb, vmem_limit):
    batch, d = x2d.shape
    num_tiles = -(-batch // tb)
    b_out = num_tiles * tb  # may exceed batch; ragged tail sliced off by caller
    return pl.pallas_call(
        _logreg_kernel,
        out_shape=jax.ShapeDtypeStruct((1, b_out), jnp.float32),
        grid_spec=pltpu.PrefetchScalarGridSpec(
            num_scalar_prefetch=0,
            grid=(num_tiles,),
            in_specs=[
                pl.BlockSpec((tb, d), lambda i: (i, 0)),             # x: batch-tiled
                pl.BlockSpec((1, d), lambda i: (0, 0)),              # w: VMEM-resident
                pl.BlockSpec(memory_space=pltpu.MemorySpace.SMEM),   # bias scalar
            ],
            out_specs=pl.BlockSpec((1, tb), lambda i: (0, i)),       # lane-dense row
        ),
        compiler_params=pltpu.CompilerParams(
            dimension_semantics=("parallel",),    # shards tiles across v7x's 2 TCs
            vmem_limit_bytes=int(vmem_limit),
        ),
        cost_estimate=pl.CostEstimate(
            flops=2 * batch * d,
            transcendentals=batch,
            bytes_accessed=x2d.dtype.itemsize * batch * d
            + w.dtype.itemsize * d + 4 * batch,
        ),
    )(x2d, w, b)


def _bk_tiled_call(x2d, w, b, tb, tk, vmem_limit):
    batch, d = x2d.shape
    num_b = -(-batch // tb)
    num_k = -(-d // tk)
    b_out = num_b * tb
    kernel = _make_logreg_kernel_ktiled(d, tk)
    return pl.pallas_call(
        kernel,
        out_shape=jax.ShapeDtypeStruct((1, b_out), jnp.float32),
        grid_spec=pltpu.PrefetchScalarGridSpec(
            num_scalar_prefetch=0,
            grid=(num_b, num_k),
            in_specs=[
                pl.BlockSpec((tb, tk), lambda i, k: (i, k)),
                pl.BlockSpec((1, tk), lambda i, k: (0, k)),
                pl.BlockSpec(memory_space=pltpu.MemorySpace.SMEM),
            ],
            out_specs=pl.BlockSpec((1, tb), lambda i, k: (0, i)),
            scratch_shapes=[pltpu.VMEM((1, tb), jnp.float32)],       # f32 accumulator
        ),
        compiler_params=pltpu.CompilerParams(
            dimension_semantics=("parallel", "arbitrary"),
            vmem_limit_bytes=int(vmem_limit),
        ),
        cost_estimate=pl.CostEstimate(
            flops=2 * batch * d,
            transcendentals=batch,
            bytes_accessed=x2d.dtype.itemsize * batch * d
            + w.dtype.itemsize * d + 4 * batch,
        ),
    )(x2d, w, b)


def logistic_regression_forward(x, weight, bias, *, block_b=None, block_k=None):
    """sigmoid(x.reshape(B, -1) @ weight.T + bias). Returns (B, 1) float32.

    `block_b` / `block_k` are testing hooks that force tile sizes.
    """
    batch = x.shape[0]
    x2d = x.reshape(batch, -1)
    if not jnp.issubdtype(x2d.dtype, jnp.floating):
        x2d = x2d.astype(jnp.float32)
    d = x2d.shape[1]
    # Keep activations in their incoming dtype (bf16 in == half the HBM bytes)
    # and match the weight to it; the MXU accumulates in f32 inside the kernel.
    w = weight.reshape(1, d).astype(x2d.dtype)
    b = bias.reshape(1).astype(jnp.float32)
    itemsize = x2d.dtype.itemsize

    x_budget, vmem_limit = _vmem_budget()

    if block_k is not None:
        tb = block_b if block_b is not None else (batch if batch <= 128 else 128)
        tk = block_k
    else:
        tb = block_b if block_b is not None else _choose_batch_tile(
            batch, d, itemsize, x_budget)
        tk = None
        if tb is None:
            tb, tk = _choose_bk_tiles(batch, d, itemsize, x_budget)

    if tk is None:
        out_row = _batch_tiled_call(x2d, w, b, tb, vmem_limit)
    else:
        out_row = _bk_tiled_call(x2d, w, b, tb, tk, vmem_limit)

    # Columns >= batch come from a ragged last tile (rows read out of bounds are
    # undefined); every kept column depends only on its own input row, so simply
    # slicing here is safe.  NOTE: keep this invariant if the kernel ever gains
    # a reduction across the batch axis.
    return out_row[0, :batch].reshape(batch, 1)


def init_params(key, height=84, width=64):
    """Deterministic init matching nn.Linear default: U(-1/sqrt(fan_in), +1/sqrt(fan_in))."""
    d = height * width
    k_w, k_b = jax.random.split(key)
    bound = 1.0 / jnp.sqrt(jnp.float32(d))
    weight = jax.random.uniform(k_w, (1, d), jnp.float32, -bound, bound)
    bias = jax.random.uniform(k_b, (1,), jnp.float32, -bound, bound)
    return weight, bias


if __name__ == "__main__":
    key = jax.random.PRNGKey(0)
    k_x, k_p = jax.random.split(key)

    height, width = 84, 64
    batch = 2
    # Input like a (B, H, W) image batch; forward flattens it to (B, H*W).
    x = jax.random.normal(k_x, (batch, height, width), jnp.float32)
    weight, bias = init_params(k_p, height, width)

    def ref_fn(xx):
        return jax.nn.sigmoid(xx.reshape(xx.shape[0], -1) @ weight.T + bias)

    # 1) Default path (small batch -> single tile, block == full array dims).
    out = jax.block_until_ready(logistic_regression_forward(x, weight, bias))
    assert out.shape == (batch, 1)
    assert jnp.allclose(out, ref_fn(x), atol=2e-3, rtol=2e-3)

    # 2) Multi-tile batch path with a ragged last tile (no jnp.pad round trip).
    xb = jax.random.normal(jax.random.PRNGKey(1), (300, height, width), jnp.float32)
    out2 = jax.block_until_ready(
        logistic_regression_forward(xb, weight, bias, block_b=128))
    assert out2.shape == (300, 1)
    assert jnp.allclose(out2, ref_fn(xb), atol=2e-3, rtol=2e-3)

    # 3) K-tiled fallback path (large-D safety net) with a ragged last K block.
    out3 = jax.block_until_ready(
        logistic_regression_forward(xb, weight, bias, block_b=128, block_k=512))
    assert out3.shape == (300, 1)
    assert jnp.allclose(out3, ref_fn(xb), atol=2e-3, rtol=2e-3)

    print("KERNEL_OK")
</pallas_src>

<mosaic_0001>
module attributes {stable_mosaic.version = 11 : i64} {
  func.func @_logreg_kernel(%arg0: i32, %arg1: memref<2x5376xf32, #tpu.memory_space<vmem>>, %arg2: memref<1x5376xf32, #tpu.memory_space<vmem>>, %arg3: memref<1xf32, #tpu.memory_space<smem>>, %arg4: memref<1x2xf32, #tpu.memory_space<vmem>>) attributes {dimension_semantics = [#tpu.dimension_semantics<parallel>], iteration_bounds = array<i64: 1>, scalar_prefetch = 0 : i64, scratch_operands = 0 : i64, tpu.core_type = #tpu.core_type<tc>, window_params = [{transform_indices = @transform_0, window_bounds = array<i64: 2, 5376>}, {pipeline_mode = #tpu.pipeline_mode<synchronous>, transform_indices = @transform_1, window_bounds = array<i64: 1, 5376>}, {transform_indices = @transform_2, window_bounds = array<i64: 1>}, {transform_indices = @transform_3, window_bounds = array<i64: 1, 2>}]} {
    %c0 = arith.constant 0 : index
    %c0_0 = arith.constant 0 : index
    %0 = vector.load %arg2[%c0, %c0_0] : memref<1x5376xf32, #tpu.memory_space<vmem>>, vector<1x5376xf32>
    %c0_1 = arith.constant 0 : index
    %c0_2 = arith.constant 0 : index
    %1 = vector.load %arg1[%c0_1, %c0_2] : memref<2x5376xf32, #tpu.memory_space<vmem>>, vector<2x5376xf32>
    %cst = arith.constant dense<0.000000e+00> : vector<1x2xf32>
    %2 = tpu.matmul %0, %1, %cst {dimension_numbers = #tpu.dot_dimension_numbers<[1], [1], [0], [0], [0, 0, 1, 0], [], []>} : vector<1x5376xf32>, vector<2x5376xf32>, vector<1x2xf32> -> vector<1x2xf32>
    %c0_3 = arith.constant 0 : index
    %3 = memref.load %arg3[%c0_3] : memref<1xf32, #tpu.memory_space<smem>>
    %4 = vector.broadcast %3 : f32 to vector<1x2xf32>
    %5 = arith.addf %2, %4 : vector<1x2xf32>
    %6 = arith.negf %5 : vector<1x2xf32>
    %7 = math.exp %6 : vector<1x2xf32>
    %cst_4 = arith.constant 1.000000e+00 : f32
    %8 = vector.broadcast %cst_4 : f32 to vector<1x2xf32>
    %9 = arith.addf %8, %7 : vector<1x2xf32>
    %10 = arith.divf %8, %9 : vector<1x2xf32>
    %c0_5 = arith.constant 0 : index
    %c0_6 = arith.constant 0 : index
    %11 = vector.load %arg4[%c0_5, %c0_6] : memref<1x2xf32, #tpu.memory_space<vmem>>, vector<1x2xf32>
    tpu.vector_store %arg4[%c0_5, %c0_6], %10 {strides = array<i32>} : memref<1x2xf32, #tpu.memory_space<vmem>>, vector<1x2xf32>,
    return
  }
  func.func @transform_0(%arg0: i32) -> (i32, i32) {
    %c0_i32 = arith.constant 0 : i32
    %c0_i32_0 = arith.constant 0 : i32
    return %arg0, %c0_i32 : i32, i32
  }
  func.func @transform_1(%arg0: i32) -> (i32, i32) {
    %c0_i32 = arith.constant 0 : i32
    %c0_i32_0 = arith.constant 0 : i32
    %c0_i32_1 = arith.constant 0 : i32
    return %c0_i32, %c0_i32_0 : i32, i32
  }
  func.func @transform_2(%arg0: i32) -> i32 {
    %c0_i32 = arith.constant 0 : i32
    %c0_i32_0 = arith.constant 0 : i32
    return %c0_i32 : i32
  }
  func.func @transform_3(%arg0: i32) -> (i32, i32) {
    %c0_i32 = arith.constant 0 : i32
    %c0_i32_0 = arith.constant 0 : i32
    return %c0_i32, %arg0 : i32, i32
  }
}

</mosaic_0001>

<bundles_post_ra>
// kernel: tpu_custom_call.1
= control target key start
LH: loop header
LB: loop body
LE: loop exit
PB: predicated region body
PF: predicated region fallthrough
CT: control target
= control target key end

     0   :  { %9 = vsyncpa [#allocation4], 0  ;;  %s2334_s0 = inlined_call_operand.hbm [shape: f32[2,5376], index: 0, kind: input, shape index: {}]   ;;  %s2335_s1 = inlined_call_operand.hbm [shape: f32[1,5376], index: 1, kind: input, shape index: {}]   ;;  %s2336_s2 = inlined_call_operand.<no memory space> [shape: f32[1], index: 2, kind: input, shape index: {}]   ;;  %s2337_s3 = inlined_call_operand.hbm [shape: f32[1,2], index: 3, kind: output, shape index: {}]  }
   0x1   :  { %10 = vsyncpa [#allocation7], 0 }
   0x2   :  { %11 = vsyncpa [#allocation5], 0  ;;  %s2132_s12 = smov [#allocation3]   ;;  %s2133_s14 = smov [#allocation6]  }
   0x3   :  { %s18_s13 = sshll.u32 %s2132_s12, 4  ;;  %s28_s15 = sshll.u32 %s2133_s14, 4  ;;  %s19_s13 = int_to_ptr.vmem [resolvable:$true] %s18_s13  ;;  %s29_s15 = int_to_ptr.vmem [resolvable:$true] %s28_s15 }
   0x4   :  { %s2060_s18 = scalar_lea.hbm %s2334_s0, 1344 }
   0x5   :  { %p2061_p0 = scmp.ne.s32.totalorder %s2334_s0, %s2060_s18  ;;  %p2064_p1 = scmp.lt.u32.totalorder %s2060_s18, %s2334_s0 }
   0x7   :  { %p2066_p2 = pnand %p2064_p1, %p2061_p0 }
   0x9   :  { %2069 = shalt.err (!%p2066_p2)
}
   0xa   :  { %s2070_s23 = scalar_lea.vmem %s19_s13, 1344  ;;  %p2075_p4 = scmp.lt.s32.totalorder %s19_s13, %s19_s13 }
   0xb   :  { %p2071_p3 = scmp.ne.s32.totalorder %s19_s13, %s2070_s23  ;;  %p2076_p5 = scmp.lt.s32.totalorder %s2070_s23, %s2070_s23 }
   0xd   :  { %p2077_p6 = por %p2076_p5, %p2075_p4 }
   0xf   :  { %p2078_p7 = pnand %p2077_p6, %p2071_p3 }
  0x11   :  { %2081 = shalt.err (!%p2078_p7)
}
  0x12   :  { %21 = dma.hbm_to_vmem [thread:$0]  %s2334_s0, 1344, %s19_s13, [#allocation4]  }
  0x13   :  { %s2082_s28 = scalar_lea.hbm %s2335_s1, 672 }
  0x14   :  { %p2083_p8 = scmp.ne.s32.totalorder %s2335_s1, %s2082_s28  ;;  %p2086_p9 = scmp.lt.u32.totalorder %s2082_s28, %s2335_s1 }
  0x16   :  { %p2088_p10 = pnand %p2086_p9, %p2083_p8 }
  0x18   :  { %2091 = shalt.err (!%p2088_p10)
}
  0x19   :  { %s2092_s6 = scalar_lea.vmem %s29_s15, 672  ;;  %p2097_p12 = scmp.lt.s32.totalorder %s29_s15, %s29_s15 }
  0x1a   :  { %p2093_p11 = scmp.ne.s32.totalorder %s29_s15, %s2092_s6  ;;  %p2098_p13 = scmp.lt.s32.totalorder %s2092_s6, %s2092_s6 }
  0x1c   :  { %p2099_p0 = por %p2098_p13, %p2097_p12 }
  0x1e   :  { %p2100_p1 = pnand %p2099_p0, %p2093_p11 }
  0x20   :  { %2103 = shalt.err (!%p2100_p1)
}
  0x21   :  { %31 = dma.hbm_to_vmem [thread:$0]  %s2335_s1, 672, %s29_s15, [#allocation7]  }
  0x22   :  { %2126 = dma.done.wait [#allocation4], 1344  }
  0x23   :  { %2127 = vsyncadd [#allocation4], 4294965952 }
  0x24   :  { %2128 = dma.done.wait [#allocation7], 672  }
  0x25   :  { %2129 = vsyncadd [#allocation7], 4294966624  ;;  %v65_v0 = vlaneseq  ;;  %v2134_v1 = vmov 1983009808   ;;  %v46_v8 = vld [vmem:[#allocation3] sm:$0xff]  ;;  %v51_v9 = vld [vmem:[#allocation3 + $0x28] sm:$0xff] }
  0x26   :  { %v288_v2 = vunpack.c.l.s4 %v2134_v1  ;;  %v2186_v10 = vld [vmem:[#allocation6] sm:$0xff]  ;;  %v286_v13 = vcombine.high %v46_v8, %v46_v8  ;;  %v371_v15 = vcombine.high %v51_v9, %v51_v9  ;;  %v2194_v17 = vld [vmem:[#allocation6 + $0x10] sm:$0xff]  ;;  %v2220_v42 = vld [vmem:[#allocation6 + $0x18] sm:$0xff]  ;;  %s2135_s9 = smov [#allocation8]   ;;  %vm1982_vm0 = vcmask 8192  }
  0x27   :  { %v66_v3 = vshrl.u32 %v65_v0, 7  ;;  %v52_v26 = vld [vmem:[#allocation3 + $0x30] sm:$0xff]  ;;  %v47_v27 = vld [vmem:[#allocation3 + $0x8] sm:$0xff]  ;;  %v53_v51 = vld [vmem:[#allocation3 + $0x38] sm:$0xff]  ;;  %s1990_s10 = sshll.u32 %s2135_s9, 4  ;;  %s1991_s10 = int_to_ptr.vmem [resolvable:$true] %s1990_s10 }
  0x28   :  { %v289_v4 = vunpack.c.0.s8 %v288_v2  ;;  %v388_v38 = vcombine.high %v52_v26, %v52_v26  ;;  %v303_v39 = vcombine.high %v47_v27, %v47_v27  ;;  %v48_v52 = vld [vmem:[#allocation3 + $0x10] sm:$0xff]  ;;  %v405_v62 = vcombine.high %v53_v51, %v53_v51  ;;  %v2248_v2 = vld [vmem:[#allocation6 + $0x8] sm:$0xff]  ;;  %s2104_s11 = scalar_lea.vmem %s1991_s10, 16  ;;  %s2108_s12 = scalar_lea.vmem %s1991_s10, 32 }
  0x29   :  { %v2182_v6 = vsub.s32 1, %v66_v3  ;;  %v2184_v7 = vsub.s32 5, %v66_v3  ;;  %v2188_v11 = vsub.s32 0, %v66_v3  ;;  %v2190_v12 = vsub.s32 4, %v66_v3  ;;  %p2105_p2 = scmp.ne.s32.totalorder %s1991_s10, %s2104_s11  ;;  %p2109_p3 = scmp.lt.s32.totalorder %s1991_s10, %s1991_s10 }
  0x2a   :  { %v2180_v5 = vsub.s32 %v289_v4, %v66_v3  ;;  %v2200_v20 = vsub.s32 3, %v66_v3  ;;  %v2202_v21 = vsub.s32 7, %v66_v3  ;;  %v2216_v40 = vsub.s32 2, %v66_v3  ;;  %p2110_p4 = scmp.lt.s32.totalorder %s2108_s12, %s2104_s11 }
  0x2b   :  { %v72_v18 = vrot.slane %v2186_v10, %v2182_v6  ;;  %v152_v19 = vrot.slane %v2194_v17, %v2184_v7  ;;  %v68_v28 = vrot.slane %v2186_v10, %v2188_v11  ;;  %v148_v29 = vrot.slane %v2194_v17, %v2190_v12 }
  0x2c   :  { %v293_v14 = vrot.slane %v46_v8, %v2180_v5  ;;  %v378_v16 = vrot.slane %v51_v9, %v2180_v5  ;;  %v385_v24 = vrot.slane %v371_v15, %v2180_v5  ;;  %v300_v25 = vrot.slane %v286_v13, %v2180_v5  ;;  %p2111_p5 = por %p2110_p4, %p2109_p3 }
  0x2d   :  { %570 = vmatprep.mubr.f32.mxu1 %v72_v18  ;;  %1270 = vmatprep.mubr.f32.mxu0 %v152_v19  ;;  %v395_v32 = vrot.slane %v52_v26, %v2180_v5  ;;  %v310_v33 = vrot.slane %v47_v27, %v2180_v5  ;;  %v80_v34 = vrot.slane %v2186_v10, %v2200_v20  ;;  %v2218_v41 = vsub.s32 6, %v66_v3  ;;  %v54_v18 = vld [vmem:[#allocation3 + $0x40] sm:$0xff]  ;;  %v49_v19 = vld [vmem:[#allocation3 + $0x18] sm:$0xff] }
  0x2e   :  { %v301_v22 = vcombine.high %v293_v14, %v293_v14  ;;  %v386_v23 = vcombine.high %v378_v16, %v378_v16  ;;  %v387_v30 = vcombine.high %v385_v24, %v385_v24  ;;  %v302_v31 = vcombine.high %v300_v25, %v300_v25  ;;  %p2112_p6 = pnand %p2111_p5, %p2105_p2 }
  0x2f   :  { %v160_v35 = vrot.slane %v2194_v17, %v2202_v21  ;;  %v403_v36 = vcombine.high %v395_v32, %v395_v32  ;;  %v318_v37 = vcombine.high %v310_v33, %v310_v33  ;;  %v402_v43 = vrot.slane %v388_v38, %v2180_v5 }
  0x30   :  { %506 = vmatprep.subr.mxu1 %v301_v22  ;;  %1206 = vmatprep.subr.mxu0 %v386_v23  ;;  %v317_v44 = vrot.slane %v303_v39, %v2180_v5  ;;  %v76_v45 = vrot.slane %v2186_v10, %v2216_v40  ;;  %v156_v46 = vrot.slane %v2194_v17, %v2218_v41 }
  0x31   :  { %507 = vmatpush1.xpose.msra.mxu1 %v293_v14  ;;  %1207 = vmatpush1.xpose.msra.mxu0 %v378_v16  ;;  %v88_v47 = vrot.slane %v2186_v10, %v2184_v7  ;;  %v168_v48 = vrot.slane %v2220_v42, %v2182_v6  ;;  %v404_v49 = vcombine.high %v402_v43, %v402_v43 }
  0x32   :  { %1276 = vmatprep.subr.mxu0 %v387_v30  ;;  %576 = vmatprep.subr.mxu1 %v302_v31  ;;  %v319_v50 = vcombine.high %v317_v44, %v317_v44  ;;  %v412_v53 = vrot.slane %v53_v51, %v2180_v5  ;;  %v327_v54 = vrot.slane %v48_v52, %v2180_v5  ;;  %v2270_v31 = vld [vmem:[#allocation6 + $0x20] sm:$0xff] }
  0x33   :  { %v84_v55 = vrot.slane %v2186_v10, %v2190_v12  ;;  %v164_v56 = vrot.slane %v2220_v42, %v2188_v11  ;;  %v132_v57 = vrot.slane %v2194_v17, %v2188_v11  ;;  %v96_v58 = vrot.slane %v2186_v10, %v2202_v21 }
  0x34   :  { %571 = vmatmul.mubr.f32.vlgmr.msra.gmra.mrb[0].mxu1 %v68_v28  ;;  %1271 = vmatmul.mubr.f32.vlgmr.msra.gmra.mrb[0].mxu0 %v148_v29  ;;  %v176_v59 = vrot.slane %v2220_v42, %v2200_v20  ;;  %v420_v60 = vcombine.high %v412_v53, %v412_v53  ;;  %v335_v61 = vcombine.high %v327_v54, %v327_v54 }
  0x35   :  { %1277 = vmatpush1.xpose.msra.mxu0 %v385_v24  ;;  %577 = vmatpush1.xpose.msra.mxu1 %v300_v25  ;;  %v320_v63 = vcombine.high %v48_v52, %v48_v52  ;;  %v144_v0 = vrot.slane %v2194_v17, %v2200_v20  ;;  %v140_v1 = vrot.slane %v2194_v17, %v2216_v40 }
  0x36   :  { %640 = vmatprep.mubr.f32.mxu1 %v80_v34  ;;  %1340 = vmatprep.mubr.f32.mxu0 %v160_v35  ;;  %v419_v3 = vrot.slane %v405_v62, %v2180_v5  ;;  %v92_v8 = vrot.slane %v2186_v10, %v2218_v41  ;;  %v172_v9 = vrot.slane %v2220_v42, %v2216_v40 }
  0x37   :  { %1346 = vmatprep.subr.mxu0 %v403_v36  ;;  %646 = vmatprep.subr.mxu1 %v318_v37  ;;  %v334_v4 = vrot.slane %v320_v63, %v2180_v5  ;;  %v104_v13 = vrot.slane %v2248_v2, %v2182_v6  ;;  %v184_v14 = vrot.slane %v2220_v42, %v2184_v7  ;;  %v2000_v63 = vld.sshfl [vmem:[#allocation3 + $0x50] sm:$0x33 pattern:$0x76325410] }
  0x38   :  { %v421_v15 = vcombine.high %v419_v3, %v419_v3  ;;  %v429_v10 = vrot.slane %v54_v18, %v2180_v5  ;;  %v344_v22 = vrot.slane %v49_v19, %v2180_v5  ;;  %v100_v23 = vrot.slane %v2248_v2, %v2188_v11 }
  0x39   :  { %v336_v16 = vcombine.high %v334_v4, %v334_v4  ;;  %v180_v24 = vrot.slane %v2220_v42, %v2190_v12  ;;  %v112_v25 = vrot.slane %v2248_v2, %v2200_v20  ;;  %v192_v26 = vrot.slane %v2220_v42, %v2202_v21 }
  0x3a   :  { %v437_v27 = vcombine.high %v429_v10, %v429_v10  ;;  %v352_v28 = vcombine.high %v344_v22, %v344_v22  ;;  %v422_v29 = vcombine.high %v54_v18, %v54_v18  ;;  %v337_v30 = vcombine.high %v49_v19, %v49_v19 }
  0x3b   :  { %v108_v34 = vrot.slane %v2248_v2, %v2216_v40  ;;  %v188_v35 = vrot.slane %v2220_v42, %v2218_v41  ;;  %v120_v36 = vrot.slane %v2248_v2, %v2184_v7  ;;  %v200_v37 = vrot.slane %v2270_v31, %v2182_v6 }
  0x3c   :  { %641 = vmatmul.mubr.f32.vlgmr.msra.gmra.mrb[0].mxu1 %v76_v45  ;;  %1341 = vmatmul.mubr.f32.vlgmr.msra.gmra.mrb[0].mxu0 %v156_v46  ;;  %v116_v46 = vrot.slane %v2248_v2, %v2190_v12 }
  0x3d   :  { %1347 = vmatpush1.xpose.msra.mxu0 %v395_v32  ;;  %647 = vmatpush1.xpose.msra.mxu1 %v310_v33  ;;  %v436_v32 = vrot.slane %v422_v29, %v2180_v5  ;;  %v351_v33 = vrot.slane %v337_v30, %v2180_v5 }
  0x3e   :  { %710 = vmatprep.mubr.f32.mxu1 %v88_v47  ;;  %1410 = vmatprep.mubr.f32.mxu0 %v168_v48  ;;  %v196_v47 = vrot.slane %v2270_v31, %v2188_v11  ;;  %v128_v48 = vrot.slane %v2248_v2, %v2202_v21 }
  0x3f   :  { %1416 = vmatprep.subr.mxu0 %v404_v49  ;;  %716 = vmatprep.subr.mxu1 %v319_v50  ;;  %v438_v38 = vcombine.high %v436_v32, %v436_v32  ;;  %v353_v39 = vcombine.high %v351_v33, %v351_v33  ;;  %v208_v49 = vrot.slane %v2270_v31, %v2200_v20 }
  0x44   :  { %711 = vmatmul.mubr.f32.vlgmr.msra.gmra.mrb[0].mxu1 %v84_v55  ;;  %1411 = vmatmul.mubr.f32.vlgmr.msra.gmra.mrb[0].mxu0 %v164_v56  ;;  %v124_v56 = vrot.slane %v2248_v2, %v2218_v41  ;;  %v224_v2 = vrot.slane %v2270_v31, %v2202_v21 }
  0x45   :  { %1417 = vmatpush1.xpose.msra.mxu0 %v402_v43  ;;  %717 = vmatpush1.xpose.msra.mxu1 %v317_v44  ;;  %v55_v43 = vld [vmem:[#allocation3 + $0x48] sm:$0xff]  ;;  %v50_v44 = vld [vmem:[#allocation3 + $0x20] sm:$0xff] }
  0x46   :  { %780 = vmatprep.mubr.f32.mxu1 %v96_v58  ;;  %1480 = vmatprep.mubr.f32.mxu0 %v176_v59  ;;  %v446_v42 = vrot.slane %v55_v43, %v2180_v5  ;;  %v361_v45 = vrot.slane %v50_v44, %v2180_v5  ;;  %v439_v52 = vcombine.high %v55_v43, %v55_v43 }
  0x47   :  { %1486 = vmatprep.subr.mxu0 %v420_v60  ;;  %786 = vmatprep.subr.mxu1 %v335_v61  ;;  %v204_v58 = vrot.slane %v2270_v31, %v2216_v40  ;;  %v136_v59 = vrot.slane %v2194_v17, %v2182_v6  ;;  %v216_v60 = vrot.slane %v2270_v31, %v2184_v7  ;;  %v45_v7 = vld [vmem:[#allocation6 + $0x28] sm:$0x3] }
  0x48   :  { %v454_v50 = vcombine.high %v446_v42, %v446_v42  ;;  %v369_v51 = vcombine.high %v361_v45, %v361_v45  ;;  %v232_v21 = vrot.slane %v45_v7, %v2182_v6 }
  0x4c   :  { %781 = vmatmul.mubr.f32.vlgmr.msra.gmra.mrb[0].mxu1 %v92_v8  ;;  %1481 = vmatmul.mubr.f32.vlgmr.msra.gmra.mrb[0].mxu0 %v172_v9 }
  0x4d   :  { %1487 = vmatpush1.xpose.msra.mxu0 %v412_v53  ;;  %787 = vmatpush1.xpose.msra.mxu1 %v327_v54  ;;  %v354_v53 = vcombine.high %v50_v44, %v50_v44  ;;  %v453_v54 = vrot.slane %v439_v52, %v2180_v5 }
  0x4e   :  { %850 = vmatprep.mubr.f32.mxu1 %v104_v13  ;;  %1550 = vmatprep.mubr.f32.mxu0 %v184_v14 }
  0x4f   :  { %1556 = vmatprep.subr.mxu0 %v421_v15  ;;  %856 = vmatprep.subr.mxu1 %v336_v16  ;;  %v368_v55 = vrot.slane %v354_v53, %v2180_v5  ;;  %v455_v61 = vcombine.high %v453_v54, %v453_v54  ;;  %v212_v5 = vrot.slane %v2270_v31, %v2190_v12 }
  0x50   :  { %v220_v12 = vrot.slane %v2270_v31, %v2218_v41 }
  0x51   :  { %v370_v62 = vcombine.high %v368_v55, %v368_v55 }
  0x54   :  { %851 = vmatmul.mubr.f32.vlgmr.msra.gmra.mrb[0].mxu1 %v100_v23  ;;  %1551 = vmatmul.mubr.f32.vlgmr.msra.gmra.mrb[0].mxu0 %v180_v24 }
  0x55   :  { %1557 = vmatpush1.xpose.msra.mxu0 %v419_v3  ;;  %857 = vmatpush1.xpose.msra.mxu1 %v334_v4  ;;  %v463_v3 = vcombine.high %v2000_v63, %v2000_v63  ;;  %v58_v4 = vstv %s2336_s2 }
  0x56   :  { %920 = vmatprep.mubr.f32.mxu1 %v112_v25  ;;  %1620 = vmatprep.mubr.f32.mxu0 %v192_v26 }
  0x57   :  { %1626 = vmatprep.subr.mxu0 %v437_v27  ;;  %926 = vmatprep.subr.mxu1 %v352_v28 }
  0x5c   :  { %921 = vmatmul.mubr.f32.vlgmr.msra.gmra.mrb[0].mxu1 %v108_v34  ;;  %1621 = vmatmul.mubr.f32.vlgmr.msra.gmra.mrb[0].mxu0 %v188_v35 }
  0x5d   :  { %1627 = vmatpush1.xpose.msra.mxu0 %v429_v10  ;;  %927 = vmatpush1.xpose.msra.mxu1 %v344_v22 }
  0x5e   :  { %990 = vmatprep.mubr.f32.mxu1 %v120_v36  ;;  %1690 = vmatprep.mubr.f32.mxu0 %v200_v37 }
  0x5f   :  { %1696 = vmatprep.subr.mxu0 %v438_v38  ;;  %996 = vmatprep.subr.mxu1 %v353_v39 }
  0x64   :  { %991 = vmatmul.mubr.f32.vlgmr.msra.gmra.mrb[0].mxu1 %v116_v46  ;;  %1691 = vmatmul.mubr.f32.vlgmr.msra.gmra.mrb[0].mxu0 %v196_v47 }
  0x65   :  { %1697 = vmatpush1.xpose.msra.mxu0 %v436_v32  ;;  %997 = vmatpush1.xpose.msra.mxu1 %v351_v33 }
  0x66   :  { %1060 = vmatprep.mubr.f32.mxu1 %v128_v48  ;;  %1760 = vmatprep.mubr.f32.mxu0 %v208_v49 }
  0x67   :  { %1766 = vmatprep.subr.mxu0 %v454_v50  ;;  %1066 = vmatprep.subr.mxu1 %v369_v51 }
  0x6c   :  { %1061 = vmatmul.mubr.f32.vlgmr.msra.gmra.mrb[0].mxu1 %v124_v56  ;;  %1761 = vmatmul.mubr.f32.vlgmr.msra.gmra.mrb[0].mxu0 %v204_v58 }
  0x6d   :  { %1767 = vmatpush1.xpose.msra.mxu0 %v446_v42  ;;  %1067 = vmatpush1.xpose.msra.mxu1 %v361_v45 }
  0x6e   :  { %1130 = vmatprep.mubr.f32.mxu1 %v136_v59  ;;  %1830 = vmatprep.mubr.f32.mxu0 %v216_v60 }
  0x6f   :  { %1836 = vmatprep.subr.mxu0 %v455_v61  ;;  %1136 = vmatprep.subr.mxu1 %v370_v62 }
  0x74   :  { %1131 = vmatmul.mubr.f32.vlgmr.msra.gmra.mrb[0].mxu1 %v132_v57  ;;  %1831 = vmatmul.mubr.f32.vlgmr.msra.gmra.mrb[0].mxu0 %v212_v5  ;;  %v228_v57 = vrot.slane %v45_v7, %v2188_v11 }
  0x75   :  { %1837 = vmatpush1.xpose.msra.mxu0 %v453_v54  ;;  %1137 = vmatpush1.xpose.msra.mxu1 %v368_v55 }
  0x76   :  { %1200 = vmatprep.mubr.f32.mxu1 %v144_v0  ;;  %1900 = vmatprep.mubr.f32.mxu0 %v224_v2 }
  0x77   :  { %1906 = vmatprep.subr.mxu0 %v463_v3 }
  0x7c   :  { %1201 = vmatmul.mubr.f32.vlgmr.msra.gmra.mrb[0].mxu1 %v140_v1  ;;  %1901 = vmatmul.mubr.f32.vlgmr.msra.gmra.mrb[0].mxu0 %v220_v12 }
  0x7d   :  { %1907 = vmatpush1.xpose.msra.mxu0 %v2000_v63  ;;  %1970 = vmatprep.mubr.f32.mxu0 %v232_v21 }
  0x84   :  { %1971 = vmatmul.mubr.f32.vlgmr.msra.gmra.mrb[0].mxu0 %v228_v57 }
 0x14f   :  { %v1202_v20 = vpop.f32.mrb[0].mxu1 }
 0x150   :  { %v1204_v0 = vpop.f32.mrb[1].mxu1  ;;  %v2002_v8 = vadd.f32 %v1202_v20, %v58_v4 }
 0x157   :  { %v1972_v41 = vpop.f32.mrb[0].mxu0 }
 0x158   :  { %v2003_v9 = vadd.f32 %v2002_v8, %v1972_v41  ;;  %v1974_v6 = vpop.f32.mrb[1].mxu0 }
 0x15a   :  { %v2001_v13 = vmul.f32 -1.442695, %v2003_v9 }
 0x15c   :  { %2056 = vpow2.f32 %v2001_v13 }
 0x166   :  { %v2057_v17 = vpop.eup %2056 }
 0x167   :  { %v1979_v40 = vadd.f32 1.0, %v2057_v17 }
 0x169   :  { %2058 = vrcp.f32 %v1979_v40 }
 0x173   :  { %v2059_v11 = vpop.eup %2058 }
 0x174   :  { %1983 = vst.msk [vmem:[#allocation8] sm:$0x1] %vm1982_vm0, %v2059_v11 }
 0x175   :  { %2115 = shalt.err (!%p2112_p6)
}
 0x176   :  { %s2116_s14 = scalar_lea.hbm %s2337_s3, 16 }
 0x177   :  { %p2117_p7 = scmp.ne.s32.totalorder %s2337_s3, %s2116_s14  ;;  %p2120_p8 = scmp.lt.u32.totalorder %s2116_s14, %s2337_s3 }
 0x179   :  { %p2122_p9 = pnand %p2120_p8, %p2117_p7 }
 0x17b   :  { %2125 = shalt.err (!%p2122_p9)
}
 0x17c   :  { %1993 = dma.vmem_to_hbm [thread:$0]  %s1991_s10, 16, %s2337_s3, [#allocation5]  }
 0x17d   :  { %2130 = dma.done.wait [#allocation5], 16  }
 0x17e   :  { %2131 = vsyncadd [#allocation5], 4294967280 }
 0x17f   :  { %1997 = vsyncpa [#allocation4], 1 }
 0x180   :  { %1998 = vsyncpa [#allocation7], 1 }
 0x181   :  { %1999 = vsyncpa [#allocation5], 1 }

</bundles_post_ra>
